<compile_context>
chip_gen: v5e
topology: v5e:2x2
jax: 0.10.0
libtpu: 0.0.40
codegen_flags: <defaults>
</compile_context>

<pallas_src>
import math

import jax
import jax.numpy as jnp
from jax.experimental import pallas as pl
from jax.experimental.pallas import tpu as pltpu


def _interp_matrix(in_size: int, out_size: int) -> jax.Array:
    """PyTorch-style bilinear (align_corners=False) 1-D interpolation matrix."""
    scale = in_size / out_size
    o = jnp.arange(out_size, dtype=jnp.float32)
    src = scale * (o + 0.5) - 0.5
    src = jnp.maximum(src, 0.0)                      # PyTorch clamps negatives to 0
    i0 = jnp.floor(src).astype(jnp.int32)
    i0 = jnp.minimum(i0, in_size - 1)
    frac = src - i0.astype(jnp.float32)
    i1 = jnp.minimum(i0 + 1, in_size - 1)
    rows = jnp.arange(out_size)
    A = jnp.zeros((out_size, in_size), jnp.float32)
    A = A.at[rows, i0].add(1.0 - frac)
    A = A.at[rows, i1].add(frac)
    return A


def _pick_tc(nc: int, h: int, w: int, h2: int, w2: int,
             itemsize: int, cdtype_size: int,
             budget_bytes: int = 20 * 1024 * 1024, cap: int = 16) -> int:
    """Largest channel-block size (divisor of nc, <= cap) fitting the VMEM budget."""
    per_ch = (2 * h * w * itemsize            # double-buffered input block
              + 2 * h2 * w2 * itemsize        # double-buffered output block
              + h * w2 * 4                    # f32 intermediate after W-interp
              + h2 * w2 * 4)                  # f32 per-channel tile before cast
    fixed = 2 * (w * w2 + h2 * h) * cdtype_size   # interpolation matrices
    tc_max = max(1, (budget_bytes - fixed) // max(per_ch, 1))
    tc_max = int(min(tc_max, cap, nc))
    tc = 1
    for d in range(1, tc_max + 1):
        if nc % d == 0:
            tc = d
    return tc


def _upsample_kernel(x_ref, awt_ref, ah_ref, o_ref):
    # x_ref:   (TC, H, W)       block of channels
    # awt_ref: (W, W2)          column (W-axis) interpolation matrix, transposed
    # ah_ref:  (H2, H)          row (H-axis) interpolation matrix
    # o_ref:   (TC, H2, W2)
    tc, h, w = x_ref.shape
    w2 = awt_ref.shape[1]
    cdtype = awt_ref.dtype                     # MXU operand dtype (bf16 or f32)

    x = x_ref[...]
    if x.dtype != cdtype:
        x = x.astype(cdtype)

    # Step 1: W-axis interpolation for all TC channels in one MXU matmul.
    #   (TC*H, W) @ (W, W2) -> (TC*H, W2), f32 accumulation.
    xw = jnp.dot(x.reshape(tc * h, w), awt_ref[...],
                 preferred_element_type=jnp.float32)
    xw = xw.reshape(tc, h, w2).astype(cdtype)

    # Step 2: H-axis interpolation, short statically-unrolled per-channel matmul
    # (avoids any cross-sublane transpose a batched dot_general would need).
    ah = ah_ref[...]
    for c in range(tc):
        oc = jnp.dot(ah, xw[c], preferred_element_type=jnp.float32)   # (H2, W2)
        o_ref[c] = oc.astype(o_ref.dtype)


def upsample_bilinear(x: jax.Array, factor=2) -> jax.Array:
    """Equivalent of F.interpolate(x, scale_factor=factor, mode='bilinear')."""
    N, C, H, W = x.shape
    H2 = int(math.floor(H * factor))
    W2 = int(math.floor(W * factor))
    nc = N * C

    # bf16 inputs run the native MXU path; everything else computes in f32.
    cdtype = jnp.bfloat16 if x.dtype == jnp.bfloat16 else jnp.float32
    csize = jnp.dtype(cdtype).itemsize
    a_h = _interp_matrix(H, H2).astype(cdtype)        # (H2, H)
    a_w_t = _interp_matrix(W, W2).T.astype(cdtype)    # (W, W2)

    itemsize = jnp.dtype(x.dtype).itemsize
    tc = _pick_tc(nc, H, W, H2, W2, itemsize, csize)
    x_flat = x.reshape(nc, H, W)

    # Scoped-VMEM request derived from the actual block sizes (double-buffered
    # in/out blocks + interp matrices + f32 intermediates + slack), clamped to
    # stay under v7x's 64 MiB physical VMEM while lifting v5e's 16 MiB default.
    vmem_needed = (2 * tc * H * W * itemsize
                   + 2 * tc * H2 * W2 * itemsize
                   + 2 * (W * W2 + H2 * H) * csize
                   + tc * (H * W2 + H2 * W2) * 4
                   + (4 << 20))
    vmem_limit = int(min(60 << 20, max(32 << 20, vmem_needed)))

    cost = pl.CostEstimate(
        flops=2 * nc * (H * W * W2 + H2 * H * W2),
        transcendentals=0,
        bytes_accessed=(nc * H * W * itemsize
                        + nc * H2 * W2 * itemsize
                        + (W * W2 + H2 * H) * csize),
    )

    out_flat = pl.pallas_call(
        _upsample_kernel,
        out_shape=jax.ShapeDtypeStruct((nc, H2, W2), x.dtype),
        grid_spec=pltpu.PrefetchScalarGridSpec(
            num_scalar_prefetch=0,
            grid=(nc // tc,),
            in_specs=[
                pl.BlockSpec((tc, H, W), lambda i: (i, 0, 0)),
                pl.BlockSpec((W, W2), lambda i: (0, 0)),
                pl.BlockSpec((H2, H), lambda i: (0, 0)),
            ],
            out_specs=pl.BlockSpec((tc, H2, W2), lambda i: (i, 0, 0)),
        ),
        compiler_params=pltpu.CompilerParams(
            dimension_semantics=("parallel",),
            vmem_limit_bytes=vmem_limit,
        ),
        cost_estimate=cost,
    )(x_flat, a_w_t, a_h)

    return out_flat.reshape(N, C, H2, W2)


if __name__ == "__main__":
    key = jax.random.PRNGKey(0)

    # Main check: shapes consistent with the module's typical use.
    N, C, H, W = 2, 4, 16, 16
    x = jax.random.normal(key, (N, C, H, W), dtype=jnp.float32)
    out = upsample_bilinear(x, factor=2)
    out = jax.block_until_ready(out)
    assert out.shape == (N, C, 2 * H, 2 * W)
    # jax.image.resize 'bilinear' uses half-pixel centers, same as PyTorch
    # align_corners=False for 2x upsampling.
    ref = jax.image.resize(x, (N, C, 2 * H, 2 * W), method="bilinear")
    assert jnp.allclose(out, ref, atol=1e-5, rtol=1e-5), "mismatch vs reference"

    # Secondary check: non-square spatial dims, channel count that is not a
    # power of two (exercises the TC divisor selection).
    x2 = jax.random.normal(jax.random.PRNGKey(1), (1, 3, 8, 24), dtype=jnp.float32)
    out2 = jax.block_until_ready(upsample_bilinear(x2, factor=2))
    ref2 = jax.image.resize(x2, (1, 3, 16, 48), method="bilinear")
    assert jnp.allclose(out2, ref2, atol=1e-5, rtol=1e-5), "mismatch vs reference (2)"

    print("KERNEL_OK")
</pallas_src>

<mosaic_0001>
module attributes {stable_mosaic.version = 11 : i64} {
  func.func @_upsample_kernel(%arg0: i32, %arg1: memref<8x16x16xf32, #tpu.memory_space<vmem>>, %arg2: memref<16x32xf32, #tpu.memory_space<vmem>>, %arg3: memref<32x16xf32, #tpu.memory_space<vmem>>, %arg4: memref<8x32x32xf32, #tpu.memory_space<vmem>>) attributes {dimension_semantics = [#tpu.dimension_semantics<parallel>], iteration_bounds = array<i64: 1>, scalar_prefetch = 0 : i64, scratch_operands = 0 : i64, tpu.core_type = #tpu.core_type<tc>, window_params = [{transform_indices = @transform_0, window_bounds = array<i64: 8, 16, 16>}, {pipeline_mode = #tpu.pipeline_mode<synchronous>, transform_indices = @transform_1, window_bounds = array<i64: 16, 32>}, {pipeline_mode = #tpu.pipeline_mode<synchronous>, transform_indices = @transform_2, window_bounds = array<i64: 32, 16>}, {transform_indices = @transform_3, window_bounds = array<i64: 8, 32, 32>}]} {
    %c0 = arith.constant 0 : index
    %c0_0 = arith.constant 0 : index
    %c0_1 = arith.constant 0 : index
    %0 = vector.load %arg1[%c0, %c0_0, %c0_1] : memref<8x16x16xf32, #tpu.memory_space<vmem>>, vector<8x16x16xf32>
    %1 = vector.shape_cast %0 : vector<8x16x16xf32> to vector<128x16xf32>
    %c0_2 = arith.constant 0 : index
    %c0_3 = arith.constant 0 : index
    %2 = vector.load %arg2[%c0_2, %c0_3] : memref<16x32xf32, #tpu.memory_space<vmem>>, vector<16x32xf32>
    %cst = arith.constant dense<0.000000e+00> : vector<128x32xf32>
    %3 = tpu.matmul %1, %2, %cst {dimension_numbers = #tpu.dot_dimension_numbers<[1], [0], [0], [1], [0, 0, 1, 1], [], []>} : vector<128x16xf32>, vector<16x32xf32>, vector<128x32xf32> -> vector<128x32xf32>
    %4 = vector.shape_cast %3 : vector<128x32xf32> to vector<8x16x32xf32>
    %c0_4 = arith.constant 0 : index
    %c0_5 = arith.constant 0 : index
    %5 = vector.load %arg3[%c0_4, %c0_5] : memref<32x16xf32, #tpu.memory_space<vmem>>, vector<32x16xf32>
    %6 = vector.extract_strided_slice %4 {offsets = [0, 0, 0], sizes = [1, 16, 32], strides = [1, 1, 1]} : vector<8x16x32xf32> to vector<1x16x32xf32>
    %7 = vector.shape_cast %6 : vector<1x16x32xf32> to vector<16x32xf32>
    %cst_6 = arith.constant dense<0.000000e+00> : vector<32x32xf32>
    %8 = tpu.matmul %5, %7, %cst_6 {dimension_numbers = #tpu.dot_dimension_numbers<[1], [0], [0], [1], [0, 0, 1, 1], [], []>} : vector<32x16xf32>, vector<16x32xf32>, vector<32x32xf32> -> vector<32x32xf32>
    %c0_7 = arith.constant 0 : index
    %c0_8 = arith.constant 0 : index
    %c0_9 = arith.constant 0 : index
    %9 = vector.load %arg4[%c0_7, %c0_8, %c0_9] : memref<8x32x32xf32, #tpu.memory_space<vmem>>, vector<1x32x32xf32>
    %10 = vector.shape_cast %9 : vector<1x32x32xf32> to vector<32x32xf32>
    %11 = vector.shape_cast %8 : vector<32x32xf32> to vector<1x32x32xf32>
    tpu.vector_store %arg4[%c0_7, %c0_8, %c0_9], %11 {strides = array<i32>} : memref<8x32x32xf32, #tpu.memory_space<vmem>>, vector<1x32x32xf32>,
    %12 = vector.extract_strided_slice %4 {offsets = [1, 0, 0], sizes = [1, 16, 32], strides = [1, 1, 1]} : vector<8x16x32xf32> to vector<1x16x32xf32>
    %13 = vector.shape_cast %12 : vector<1x16x32xf32> to vector<16x32xf32>
    %cst_10 = arith.constant dense<0.000000e+00> : vector<32x32xf32>
    %14 = tpu.matmul %5, %13, %cst_10 {dimension_numbers = #tpu.dot_dimension_numbers<[1], [0], [0], [1], [0, 0, 1, 1], [], []>} : vector<32x16xf32>, vector<16x32xf32>, vector<32x32xf32> -> vector<32x32xf32>
    %c1 = arith.constant 1 : index
    %c0_11 = arith.constant 0 : index
    %c0_12 = arith.constant 0 : index
    %15 = vector.load %arg4[%c1, %c0_11, %c0_12] : memref<8x32x32xf32, #tpu.memory_space<vmem>>, vector<1x32x32xf32>
    %16 = vector.shape_cast %15 : vector<1x32x32xf32> to vector<32x32xf32>
    %17 = vector.shape_cast %14 : vector<32x32xf32> to vector<1x32x32xf32>
    tpu.vector_store %arg4[%c1, %c0_11, %c0_12], %17 {strides = array<i32>} : memref<8x32x32xf32, #tpu.memory_space<vmem>>, vector<1x32x32xf32>,
    %18 = vector.extract_strided_slice %4 {offsets = [2, 0, 0], sizes = [1, 16, 32], strides = [1, 1, 1]} : vector<8x16x32xf32> to vector<1x16x32xf32>
    %19 = vector.shape_cast %18 : vector<1x16x32xf32> to vector<16x32xf32>
    %cst_13 = arith.constant dense<0.000000e+00> : vector<32x32xf32>
    %20 = tpu.matmul %5, %19, %cst_13 {dimension_numbers = #tpu.dot_dimension_numbers<[1], [0], [0], [1], [0, 0, 1, 1], [], []>} : vector<32x16xf32>, vector<16x32xf32>, vector<32x32xf32> -> vector<32x32xf32>
    %c2 = arith.constant 2 : index
    %c0_14 = arith.constant 0 : index
    %c0_15 = arith.constant 0 : index
    %21 = vector.load %arg4[%c2, %c0_14, %c0_15] : memref<8x32x32xf32, #tpu.memory_space<vmem>>, vector<1x32x32xf32>
    %22 = vector.shape_cast %21 : vector<1x32x32xf32> to vector<32x32xf32>
    %23 = vector.shape_cast %20 : vector<32x32xf32> to vector<1x32x32xf32>
    tpu.vector_store %arg4[%c2, %c0_14, %c0_15], %23 {strides = array<i32>} : memref<8x32x32xf32, #tpu.memory_space<vmem>>, vector<1x32x32xf32>,
    %24 = vector.extract_strided_slice %4 {offsets = [3, 0, 0], sizes = [1, 16, 32], strides = [1, 1, 1]} : vector<8x16x32xf32> to vector<1x16x32xf32>
    %25 = vector.shape_cast %24 : vector<1x16x32xf32> to vector<16x32xf32>
    %cst_16 = arith.constant dense<0.000000e+00> : vector<32x32xf32>
    %26 = tpu.matmul %5, %25, %cst_16 {dimension_numbers = #tpu.dot_dimension_numbers<[1], [0], [0], [1], [0, 0, 1, 1], [], []>} : vector<32x16xf32>, vector<16x32xf32>, vector<32x32xf32> -> vector<32x32xf32>
    %c3 = arith.constant 3 : index
    %c0_17 = arith.constant 0 : index
    %c0_18 = arith.constant 0 : index
    %27 = vector.load %arg4[%c3, %c0_17, %c0_18] : memref<8x32x32xf32, #tpu.memory_space<vmem>>, vector<1x32x32xf32>
    %28 = vector.shape_cast %27 : vector<1x32x32xf32> to vector<32x32xf32>
    %29 = vector.shape_cast %26 : vector<32x32xf32> to vector<1x32x32xf32>
    tpu.vector_store %arg4[%c3, %c0_17, %c0_18], %29 {strides = array<i32>} : memref<8x32x32xf32, #tpu.memory_space<vmem>>, vector<1x32x32xf32>,
    %30 = vector.extract_strided_slice %4 {offsets = [4, 0, 0], sizes = [1, 16, 32], strides = [1, 1, 1]} : vector<8x16x32xf32> to vector<1x16x32xf32>
    %31 = vector.shape_cast %30 : vector<1x16x32xf32> to vector<16x32xf32>
    %cst_19 = arith.constant dense<0.000000e+00> : vector<32x32xf32>
    %32 = tpu.matmul %5, %31, %cst_19 {dimension_numbers = #tpu.dot_dimension_numbers<[1], [0], [0], [1], [0, 0, 1, 1], [], []>} : vector<32x16xf32>, vector<16x32xf32>, vector<32x32xf32> -> vector<32x32xf32>
    %c4 = arith.constant 4 : index
    %c0_20 = arith.constant 0 : index
    %c0_21 = arith.constant 0 : index
    %33 = vector.load %arg4[%c4, %c0_20, %c0_21] : memref<8x32x32xf32, #tpu.memory_space<vmem>>, vector<1x32x32xf32>
    %34 = vector.shape_cast %33 : vector<1x32x32xf32> to vector<32x32xf32>
    %35 = vector.shape_cast %32 : vector<32x32xf32> to vector<1x32x32xf32>
    tpu.vector_store %arg4[%c4, %c0_20, %c0_21], %35 {strides = array<i32>} : memref<8x32x32xf32, #tpu.memory_space<vmem>>, vector<1x32x32xf32>,
    %36 = vector.extract_strided_slice %4 {offsets = [5, 0, 0], sizes = [1, 16, 32], strides = [1, 1, 1]} : vector<8x16x32xf32> to vector<1x16x32xf32>
    %37 = vector.shape_cast %36 : vector<1x16x32xf32> to vector<16x32xf32>
    %cst_22 = arith.constant dense<0.000000e+00> : vector<32x32xf32>
    %38 = tpu.matmul %5, %37, %cst_22 {dimension_numbers = #tpu.dot_dimension_numbers<[1], [0], [0], [1], [0, 0, 1, 1], [], []>} : vector<32x16xf32>, vector<16x32xf32>, vector<32x32xf32> -> vector<32x32xf32>
    %c5 = arith.constant 5 : index
    %c0_23 = arith.constant 0 : index
    %c0_24 = arith.constant 0 : index
    %39 = vector.load %arg4[%c5, %c0_23, %c0_24] : memref<8x32x32xf32, #tpu.memory_space<vmem>>, vector<1x32x32xf32>
    %40 = vector.shape_cast %39 : vector<1x32x32xf32> to vector<32x32xf32>
    %41 = vector.shape_cast %38 : vector<32x32xf32> to vector<1x32x32xf32>
    tpu.vector_store %arg4[%c5, %c0_23, %c0_24], %41 {strides = array<i32>} : memref<8x32x32xf32, #tpu.memory_space<vmem>>, vector<1x32x32xf32>,
    %42 = vector.extract_strided_slice %4 {offsets = [6, 0, 0], sizes = [1, 16, 32], strides = [1, 1, 1]} : vector<8x16x32xf32> to vector<1x16x32xf32>
    %43 = vector.shape_cast %42 : vector<1x16x32xf32> to vector<16x32xf32>
    %cst_25 = arith.constant dense<0.000000e+00> : vector<32x32xf32>
    %44 = tpu.matmul %5, %43, %cst_25 {dimension_numbers = #tpu.dot_dimension_numbers<[1], [0], [0], [1], [0, 0, 1, 1], [], []>} : vector<32x16xf32>, vector<16x32xf32>, vector<32x32xf32> -> vector<32x32xf32>
    %c6 = arith.constant 6 : index
    %c0_26 = arith.constant 0 : index
    %c0_27 = arith.constant 0 : index
    %45 = vector.load %arg4[%c6, %c0_26, %c0_27] : memref<8x32x32xf32, #tpu.memory_space<vmem>>, vector<1x32x32xf32>
    %46 = vector.shape_cast %45 : vector<1x32x32xf32> to vector<32x32xf32>
    %47 = vector.shape_cast %44 : vector<32x32xf32> to vector<1x32x32xf32>
    tpu.vector_store %arg4[%c6, %c0_26, %c0_27], %47 {strides = array<i32>} : memref<8x32x32xf32, #tpu.memory_space<vmem>>, vector<1x32x32xf32>,
    %48 = vector.extract_strided_slice %4 {offsets = [7, 0, 0], sizes = [1, 16, 32], strides = [1, 1, 1]} : vector<8x16x32xf32> to vector<1x16x32xf32>
    %49 = vector.shape_cast %48 : vector<1x16x32xf32> to vector<16x32xf32>
    %cst_28 = arith.constant dense<0.000000e+00> : vector<32x32xf32>
    %50 = tpu.matmul %5, %49, %cst_28 {dimension_numbers = #tpu.dot_dimension_numbers<[1], [0], [0], [1], [0, 0, 1, 1], [], []>} : vector<32x16xf32>, vector<16x32xf32>, vector<32x32xf32> -> vector<32x32xf32>
    %c7 = arith.constant 7 : index
    %c0_29 = arith.constant 0 : index
    %c0_30 = arith.constant 0 : index
    %51 = vector.load %arg4[%c7, %c0_29, %c0_30] : memref<8x32x32xf32, #tpu.memory_space<vmem>>, vector<1x32x32xf32>
    %52 = vector.shape_cast %51 : vector<1x32x32xf32> to vector<32x32xf32>
    %53 = vector.shape_cast %50 : vector<32x32xf32> to vector<1x32x32xf32>
    tpu.vector_store %arg4[%c7, %c0_29, %c0_30], %53 {strides = array<i32>} : memref<8x32x32xf32, #tpu.memory_space<vmem>>, vector<1x32x32xf32>,
    return
  }
  func.func @transform_0(%arg0: i32) -> (i32, i32, i32) {
    %c0_i32 = arith.constant 0 : i32
    %c0_i32_0 = arith.constant 0 : i32
    %c0_i32_1 = arith.constant 0 : i32
    return %arg0, %c0_i32, %c0_i32_0 : i32, i32, i32
  }
  func.func @transform_1(%arg0: i32) -> (i32, i32) {
    %c0_i32 = arith.constant 0 : i32
    %c0_i32_0 = arith.constant 0 : i32
    %c0_i32_1 = arith.constant 0 : i32
    return %c0_i32, %c0_i32_0 : i32, i32
  }
  func.func @transform_2(%arg0: i32) -> (i32, i32) {
    %c0_i32 = arith.constant 0 : i32
    %c0_i32_0 = arith.constant 0 : i32
    %c0_i32_1 = arith.constant 0 : i32
    return %c0_i32, %c0_i32_0 : i32, i32
  }
  func.func @transform_3(%arg0: i32) -> (i32, i32, i32) {
    %c0_i32 = arith.constant 0 : i32
    %c0_i32_0 = arith.constant 0 : i32
    %c0_i32_1 = arith.constant 0 : i32
    return %arg0, %c0_i32, %c0_i32_0 : i32, i32, i32
  }
}

</mosaic_0001>

<bundles_post_ra>
// kernel: tpu_custom_call.1
= control target key start
LH: loop header
LB: loop body
LE: loop exit
PB: predicated region body
PF: predicated region fallthrough
CT: control target
= control target key end

     0   :  { %8 = vsyncpa [#allocation3], 0  ;;  %s710_s0 = inlined_call_operand.hbm [shape: f32[8,16,16], index: 0, kind: input, shape index: {}]   ;;  %s711_s1 = inlined_call_operand.vmem [shape: f32[16,32], index: 1, kind: input, shape index: {}]   ;;  %s712_s2 = inlined_call_operand.vmem [shape: f32[32,16], index: 2, kind: input, shape index: {}]   ;;  %s713_s3 = inlined_call_operand.hbm [shape: f32[8,32,32], index: 3, kind: output, shape index: {}]  }
   0x1   :  { %9 = vsyncpa [#allocation4], 0  ;;  %s14_s14 = sshll.u32 %s710_s0, 4  ;;  %s576_s15 = smov [#allocation2]   ;;  %s15_s14 = int_to_ptr.hbm [resolvable:$true] %s14_s14 }
   0x2   :  { %s16_s16 = sshll.u32 %s576_s15, 4  ;;  %s577_s17 = smov 128   ;;  %s17_s16 = int_to_ptr.vmem [resolvable:$true] %s16_s16 }
   0x3   :  { %s578_s18 = smov 8  }
   0x4   :  { %22 = dma.hbm_to_vmem [thread:$0]  %s15_s14, 2048, %s17_s16, [#allocation3], %s577_s17, %s577_s17, %s578_s18  }
   0x5   :  { %572 = dma.done.wait [#allocation3], 2048  }
   0x6   :  { %573 = vsyncadd [#allocation3], 4294965248  ;;  %v48_v0 = vld [vmem:[%s711_s1 + $0x8] sm:$0xff]  ;;  %v47_v1 = vld [vmem:[%s711_s1] sm:$0xff]  ;;  %vm49_vm0 = vcmask 130048   ;;  %vm208_vm1 = vcmask 261120  }
   0x7   :  { %112 = vmatpush.msra.mxu0 %v48_v0  ;;  %v31_v2 = vld [vmem:[#allocation2] sm:$0xff]  ;;  %518 = vmatpush.msra.mxu3 %v48_v0  ;;  %v32_v3 = vld [vmem:[#allocation2 + $0x8] sm:$0xff]  ;;  %v33_v4 = vld [vmem:[#allocation2 + $0x10] sm:$0xff]  ;;  %s457_s5 = sshll.u32 %s713_s3, 4  ;;  %s458_s5 = int_to_ptr.hbm [resolvable:$true] %s457_s5 }
   0x8   :  { %v34_v5 = vld [vmem:[#allocation2 + $0x18] sm:$0xff]  ;;  %v35_v6 = vld [vmem:[#allocation2 + $0x20] sm:$0xff]  ;;  %v36_v8 = vld [vmem:[#allocation2 + $0x28] sm:$0xff] }
   0x9   :  { %113 = vmatpush.msra.mxu0 %v47_v1  ;;  %519 = vmatpush.msra.mxu3 %v47_v1  ;;  %v43_v7 = vld [vmem:[#allocation2 + $0x60] sm:$0xff]  ;;  %v44_v9 = vld [vmem:[#allocation2 + $0x68] sm:$0xff]  ;;  %v37_v10 = vld [vmem:[#allocation2 + $0x30] sm:$0xff] }
   0xa   :  { %470 = vmatmul.msk.f32.vlgmr.msra.gmra.mxu0 %vm49_vm0, %v31_v2  ;;  %482 = vmatmul.msk.f32.vlgmr.msra.gmra.mxu3 %vm49_vm0, %v43_v7  ;;  %v45_v11 = vld [vmem:[#allocation2 + $0x70] sm:$0xff]  ;;  %v38_v12 = vld [vmem:[#allocation2 + $0x38] sm:$0xff]  ;;  %v39_v14 = vld [vmem:[#allocation2 + $0x40] sm:$0xff] }
   0xb   :  { %v46_v13 = vld [vmem:[#allocation2 + $0x78] sm:$0xff]  ;;  %v40_v15 = vld [vmem:[#allocation2 + $0x48] sm:$0xff]  ;;  %v41_v16 = vld [vmem:[#allocation2 + $0x50] sm:$0xff] }
   0xc   :  { %v42_v17 = vld [vmem:[#allocation2 + $0x58] sm:$0xff]  ;;  %v163_v20 = vld [vmem:[%s712_s2] sm:$0xff]  ;;  %v164_v22 = vld [vmem:[%s712_s2 + $0x8] sm:$0xff] }
   0xd   :  { %v165_v24 = vld [vmem:[%s712_s2 + $0x10] sm:$0xff]  ;;  %v166_v26 = vld [vmem:[%s712_s2 + $0x18] sm:$0xff]  ;;  %s579_s2 = smov [#allocation5]  }
   0xe   :  { %s455_s29 = sshll.u32 %s579_s2, 4  ;;  %s456_s29 = int_to_ptr.vmem [resolvable:$true] %s455_s29 }
  0x12   :  { %471 = vmatmul.msk.f32.gmra.mxu0 %vm49_vm0, %v32_v3  ;;  %483 = vmatmul.msk.f32.gmra.mxu3 %vm49_vm0, %v44_v9 }
  0x1a   :  { %472 = vmatmul.msk.f32.gmra.mxu0 %vm49_vm0, %v33_v4  ;;  %484 = vmatmul.msk.f32.gmra.mxu3 %vm49_vm0, %v45_v11 }
  0x22   :  { %473 = vmatmul.msk.f32.gmra.mxu0 %vm49_vm0, %v34_v5  ;;  %485 = vmatmul.msk.f32.gmra.mxu3 %vm49_vm0, %v46_v13 }
  0x2a   :  { %474 = vmatmul.msk.f32.gmra.mxu0 %vm49_vm0, %v35_v6 }
  0x32   :  { %475 = vmatmul.msk.f32.gmra.mxu0 %vm49_vm0, %v36_v8 }
  0x3a   :  { %476 = vmatmul.msk.f32.gmra.mxu0 %vm49_vm0, %v37_v10 }
  0x42   :  { %477 = vmatmul.msk.f32.gmra.mxu0 %vm49_vm0, %v38_v12 }
  0x4a   :  { %478 = vmatmul.msk.f32.gmra.mxu0 %vm49_vm0, %v39_v14 }
  0x52   :  { %479 = vmatmul.msk.f32.gmra.mxu0 %vm49_vm0, %v40_v15 }
  0x5a   :  { %480 = vmatmul.msk.f32.gmra.mxu0 %vm49_vm0, %v41_v16 }
  0x62   :  { %481 = vmatmul.msk.f32.gmra.mxu0 %vm49_vm0, %v42_v17 }
  0x87   :  { %v115_v18 = vpop.f32.mrf.mxu0 }
  0x8d   :  { %v151_v28 = vpop.f32.mrf.mxu3 }
  0x8f   :  { %v118_v19 = vpop.f32.mrf.mxu0 }
  0x90   :  { %193 = vmatpush.msra.mxu1 %v118_v19 }
  0x92   :  { %194 = vmatpush.msra.mxu1 %v115_v18 }
  0x93   :  { %486 = vmatmul.msk.f32.vlgmr.msra.gmra.mxu1 %vm49_vm0, %v163_v20 }
  0x95   :  { %v154_v30 = vpop.f32.mrf.mxu3 }
  0x97   :  { %v121_v21 = vpop.f32.mrf.mxu0 }
  0x9b   :  { %487 = vmatmul.msk.f32.gmra.mxu1 %vm49_vm0, %v164_v22 }
  0x9d   :  { %v157_v32 = vpop.f32.mrf.mxu3 }
  0x9f   :  { %v124_v23 = vpop.f32.mrf.mxu0 }
  0xa0   :  { %227 = vmatpush.msra.mxu2 %v124_v23 }
  0xa2   :  { %228 = vmatpush.msra.mxu2 %v121_v21 }
  0xa3   :  { %490 = vmatmul.msk.f32.vlgmr.msra.gmra.mxu2 %vm49_vm0, %v163_v20  ;;  %488 = vmatmul.msk.f32.gmra.mxu1 %vm49_vm0, %v165_v24 }
  0xa5   :  { %v160_v35 = vpop.f32.mrf.mxu3 }
  0xa7   :  { %v127_v25 = vpop.f32.mrf.mxu0 }
  0xab   :  { %491 = vmatmul.msk.f32.gmra.mxu2 %vm49_vm0, %v164_v22  ;;  %489 = vmatmul.msk.f32.gmra.mxu1 %vm49_vm0, %v166_v26 }
  0xaf   :  { %v130_v27 = vpop.f32.mrf.mxu0 }
  0xb0   :  { %261 = vmatpush.msrb.mxu3 %v130_v27 }
  0xb2   :  { %262 = vmatpush.msrb.mxu3 %v127_v25 }
  0xb3   :  { %492 = vmatmul.msk.f32.gmra.mxu2 %vm49_vm0, %v165_v24  ;;  %494 = vmatmul.msk.f32.vlgmr.msrb.gmra.mxu3 %vm49_vm0, %v163_v20 }
  0xb7   :  { %v133_v29 = vpop.f32.mrf.mxu0 }
  0xbb   :  { %493 = vmatmul.msk.f32.gmra.mxu2 %vm49_vm0, %v166_v26  ;;  %495 = vmatmul.msk.f32.gmra.mxu3 %vm49_vm0, %v164_v22 }
  0xbf   :  { %v136_v31 = vpop.f32.mrf.mxu0 }
  0xc0   :  { %295 = vmatpush.msrb.mxu1 %v136_v31 }
  0xc2   :  { %296 = vmatpush.msrb.mxu1 %v133_v29 }
  0xc3   :  { %496 = vmatmul.msk.f32.gmra.mxu3 %vm49_vm0, %v165_v24  ;;  %498 = vmatmul.msk.f32.vlgmr.msrb.gmra.mxu1 %vm49_vm0, %v163_v20 }
  0xc4   :  { %397 = vmatpush.msra.mxu1 %v154_v30 }
  0xc6   :  { %398 = vmatpush.msra.mxu1 %v151_v28 }
  0xc7   :  { %v139_v33 = vpop.f32.mrf.mxu0 }
  0xcb   :  { %497 = vmatmul.msk.f32.gmra.mxu3 %vm49_vm0, %v166_v26  ;;  %499 = vmatmul.msk.f32.gmra.mxu1 %vm49_vm0, %v164_v22 }
  0xcf   :  { %v142_v34 = vpop.f32.mrf.mxu0 }
  0xd0   :  { %329 = vmatpush.msrb.mxu2 %v142_v34 }
  0xd2   :  { %330 = vmatpush.msrb.mxu2 %v139_v33 }
  0xd3   :  { %502 = vmatmul.msk.f32.vlgmr.msrb.gmra.mxu2 %vm49_vm0, %v163_v20  ;;  %500 = vmatmul.msk.f32.gmra.mxu1 %vm49_vm0, %v165_v24 }
  0xd4   :  { %431 = vmatpush.msra.mxu2 %v160_v35 }
  0xd6   :  { %432 = vmatpush.msra.mxu2 %v157_v32 }
  0xd7   :  { %v145_v36 = vpop.f32.mrf.mxu0 }
  0xdb   :  { %503 = vmatmul.msk.f32.gmra.mxu2 %vm49_vm0, %v164_v22  ;;  %501 = vmatmul.msk.f32.gmra.mxu1 %vm49_vm0, %v166_v26 }
  0xdf   :  { %v148_v37 = vpop.f32.mrf.mxu0 }
  0xe0   :  { %363 = vmatpush.msra.mxu3 %v148_v37 }
  0xe2   :  { %364 = vmatpush.msra.mxu3 %v145_v36 }
  0xe3   :  { %506 = vmatmul.msk.f32.vlgmr.msra.gmra.mxu3 %vm49_vm0, %v163_v20  ;;  %504 = vmatmul.msk.f32.gmra.mxu2 %vm49_vm0, %v165_v24 }
  0xe4   :  { %510 = vmatmul.msk.f32.vlgmr.msra.gmra.mxu1 %vm49_vm0, %v163_v20 }
  0xeb   :  { %507 = vmatmul.msk.f32.gmra.mxu3 %vm49_vm0, %v164_v22  ;;  %505 = vmatmul.msk.f32.gmra.mxu2 %vm49_vm0, %v166_v26 }
  0xec   :  { %511 = vmatmul.msk.f32.gmra.mxu1 %vm49_vm0, %v164_v22 }
  0xf3   :  { %508 = vmatmul.msk.f32.gmra.mxu3 %vm49_vm0, %v165_v24  ;;  %514 = vmatmul.msk.f32.vlgmr.msra.gmra.mxu2 %vm49_vm0, %v163_v20 }
  0xf4   :  { %512 = vmatmul.msk.f32.gmra.mxu1 %vm49_vm0, %v165_v24 }
  0xfb   :  { %509 = vmatmul.msk.f32.gmra.mxu3 %vm49_vm0, %v166_v26  ;;  %515 = vmatmul.msk.f32.gmra.mxu2 %vm49_vm0, %v164_v22 }
  0xfc   :  { %513 = vmatmul.msk.f32.gmra.mxu1 %vm49_vm0, %v166_v26 }
 0x103   :  { %516 = vmatmul.msk.f32.gmra.mxu2 %vm49_vm0, %v165_v24 }
 0x10b   :  { %517 = vmatmul.msk.f32.gmra.mxu2 %vm49_vm0, %v166_v26 }
 0x110   :  { %v196_v38 = vpop.f32.mrf.mxu1 }
 0x111   :  { %209 = vst.msk [vmem:[#allocation5] sm:$0xff] %vm208_vm1, %v196_v38 }
 0x118   :  { %v199_v39 = vpop.f32.mrf.mxu1 }
 0x119   :  { %210 = vst.msk [vmem:[#allocation5 + $0x8] sm:$0xff] %vm208_vm1, %v199_v39 }
 0x120   :  { %v202_v40 = vpop.f32.mrf.mxu1 }
 0x121   :  { %211 = vst.msk [vmem:[#allocation5 + $0x10] sm:$0xff] %vm208_vm1, %v202_v40 }
 0x126   :  { %v230_v41 = vpop.f32.mrf.mxu2 }
 0x127   :  { %243 = vst.msk [vmem:[#allocation5 + $0x20] sm:$0xff] %vm208_vm1, %v230_v41 }
 0x128   :  { %v205_v42 = vpop.f32.mrf.mxu1 }
 0x129   :  { %212 = vst.msk [vmem:[#allocation5 + $0x18] sm:$0xff] %vm208_vm1, %v205_v42 }
 0x12e   :  { %v233_v43 = vpop.f32.mrf.mxu2 }
 0x12f   :  { %244 = vst.msk [vmem:[#allocation5 + $0x28] sm:$0xff] %vm208_vm1, %v233_v43 }
 0x136   :  { %v236_v44 = vpop.f32.mrf.mxu2  ;;  %v264_v45 = vpop.f32.mrf.mxu3 }
 0x137   :  { %245 = vst.msk [vmem:[#allocation5 + $0x30] sm:$0xff] %vm208_vm1, %v236_v44 }
 0x138   :  { %277 = vst.msk [vmem:[#allocation5 + $0x40] sm:$0xff] %vm208_vm1, %v264_v45 }
 0x13e   :  { %v239_v46 = vpop.f32.mrf.mxu2  ;;  %v267_v47 = vpop.f32.mrf.mxu3 }
 0x13f   :  { %246 = vst.msk [vmem:[#allocation5 + $0x38] sm:$0xff] %vm208_vm1, %v239_v46 }
 0x140   :  { %278 = vst.msk [vmem:[#allocation5 + $0x48] sm:$0xff] %vm208_vm1, %v267_v47  ;;  %v298_v48 = vpop.f32.mrf.mxu1 }
 0x141   :  { %311 = vst.msk [vmem:[#allocation5 + $0x60] sm:$0xff] %vm208_vm1, %v298_v48 }
 0x146   :  { %v270_v49 = vpop.f32.mrf.mxu3 }
 0x147   :  { %279 = vst.msk [vmem:[#allocation5 + $0x50] sm:$0xff] %vm208_vm1, %v270_v49 }
 0x148   :  { %v301_v50 = vpop.f32.mrf.mxu1 }
 0x149   :  { %312 = vst.msk [vmem:[#allocation5 + $0x68] sm:$0xff] %vm208_vm1, %v301_v50 }
 0x14e   :  { %v273_v51 = vpop.f32.mrf.mxu3 }
 0x14f   :  { %280 = vst.msk [vmem:[#allocation5 + $0x58] sm:$0xff] %vm208_vm1, %v273_v51 }
 0x150   :  { %v304_v52 = vpop.f32.mrf.mxu1 }
 0x151   :  { %313 = vst.msk [vmem:[#allocation5 + $0x70] sm:$0xff] %vm208_vm1, %v304_v52 }
 0x156   :  { %v332_v53 = vpop.f32.mrf.mxu2 }
 0x157   :  { %345 = vst.msk [vmem:[#allocation5 + $0x80] sm:$0xff] %vm208_vm1, %v332_v53 }
 0x158   :  { %v307_v54 = vpop.f32.mrf.mxu1 }
 0x159   :  { %314 = vst.msk [vmem:[#allocation5 + $0x78] sm:$0xff] %vm208_vm1, %v307_v54 }
 0x15e   :  { %v335_v55 = vpop.f32.mrf.mxu2 }
 0x15f   :  { %346 = vst.msk [vmem:[#allocation5 + $0x88] sm:$0xff] %vm208_vm1, %v335_v55 }
 0x161   :  { %v400_v56 = vpop.f32.mrf.mxu1 }
 0x162   :  { %413 = vst.msk [vmem:[#allocation5 + $0xc0] sm:$0xff] %vm208_vm1, %v400_v56 }
 0x166   :  { %v366_v57 = vpop.f32.mrf.mxu3  ;;  %v338_v58 = vpop.f32.mrf.mxu2 }
 0x167   :  { %379 = vst.msk [vmem:[#allocation5 + $0xa0] sm:$0xff] %vm208_vm1, %v366_v57 }
 0x168   :  { %347 = vst.msk [vmem:[#allocation5 + $0x90] sm:$0xff] %vm208_vm1, %v338_v58 }
 0x169   :  { %v403_v59 = vpop.f32.mrf.mxu1 }
 0x16a   :  { %414 = vst.msk [vmem:[#allocation5 + $0xc8] sm:$0xff] %vm208_vm1, %v403_v59 }
 0x16e   :  { %v369_v60 = vpop.f32.mrf.mxu3  ;;  %v341_v61 = vpop.f32.mrf.mxu2 }
 0x16f   :  { %380 = vst.msk [vmem:[#allocation5 + $0xa8] sm:$0xff] %vm208_vm1, %v369_v60 }
 0x170   :  { %348 = vst.msk [vmem:[#allocation5 + $0x98] sm:$0xff] %vm208_vm1, %v341_v61 }
 0x171   :  { %v406_v62 = vpop.f32.mrf.mxu1 }
 0x172   :  { %415 = vst.msk [vmem:[#allocation5 + $0xd0] sm:$0xff] %vm208_vm1, %v406_v62 }
 0x176   :  { %v372_v63 = vpop.f32.mrf.mxu3  ;;  %v434_v0 = vpop.f32.mrf.mxu2 }
 0x177   :  { %381 = vst.msk [vmem:[#allocation5 + $0xb0] sm:$0xff] %vm208_vm1, %v372_v63 }
 0x178   :  { %447 = vst.msk [vmem:[#allocation5 + $0xe0] sm:$0xff] %vm208_vm1, %v434_v0 }
 0x179   :  { %v409_v1 = vpop.f32.mrf.mxu1 }
 0x17a   :  { %416 = vst.msk [vmem:[#allocation5 + $0xd8] sm:$0xff] %vm208_vm1, %v409_v1 }
 0x17e   :  { %v375_v2 = vpop.f32.mrf.mxu3  ;;  %v437_v3 = vpop.f32.mrf.mxu2 }
 0x17f   :  { %382 = vst.msk [vmem:[#allocation5 + $0xb8] sm:$0xff] %vm208_vm1, %v375_v2 }
 0x180   :  { %448 = vst.msk [vmem:[#allocation5 + $0xe8] sm:$0xff] %vm208_vm1, %v437_v3 }
 0x186   :  { %v440_v4 = vpop.f32.mrf.mxu2 }
 0x187   :  { %449 = vst.msk [vmem:[#allocation5 + $0xf0] sm:$0xff] %vm208_vm1, %v440_v4 }
 0x18e   :  { %v443_v5 = vpop.f32.mrf.mxu2 }
 0x18f   :  { %450 = vst.msk [vmem:[#allocation5 + $0xf8] sm:$0xff] %vm208_vm1, %v443_v5 }
 0x190   :  { %463 = dma.vmem_to_hbm [thread:$0]  %s456_s29, 4096, %s458_s5, [#allocation4], %s577_s17, %s577_s17, %s578_s18  }
 0x191   :  { %574 = dma.done.wait [#allocation4], 4096  }
 0x192   :  { %575 = vsyncadd [#allocation4], 4294963200 }
 0x193   :  { %468 = vsyncpa [#allocation3], 1 }
 0x194   :  { %469 = vsyncpa [#allocation4], 1 }

</bundles_post_ra>
